<compile_context>
chip_gen: v5e
topology: v5e:2x2
jax: 0.10.0
libtpu: 0.0.40
codegen_flags: <defaults>
</compile_context>

<pallas_src>
import jax
import jax.numpy as jnp
from jax.experimental import pallas as pl
from jax.experimental.pallas import tpu as pltpu

EPS = 1e-6
NEG_SLOPE = 0.2


def _vnn_kernel(x_ref, w_ref, pool_ref, out_ref):
    # x_ref   : (C_in, 3*TB*N)   TB batch elements, lanes ordered (component k, b_local, n)
    # w_ref   : (2H, C_in)       rows [0:H] = W1, rows [H:2H] = Wd @ W1
    # pool_ref: (3*TB*N, 3*TB)   block-diagonal mean-pool matrix (1/N entries)
    # out_ref : (H, 3*TB)        pooled hidden features, columns ordered (k, b_local)
    H = out_ref.shape[0]
    L = x_ref.shape[1]
    seg = L // 3  # = TB*N

    # Single MXU push produces both p = W1@x and d = (Wd@W1)@x.
    pd = jnp.dot(w_ref[...], x_ref[...], preferred_element_type=jnp.float32)  # (2H, L)
    p = pd[:H, :]
    d = pd[H:, :]

    # Per spatial-component views: static lane slices at segment boundaries.
    p0, p1, p2 = p[:, :seg], p[:, seg:2 * seg], p[:, 2 * seg:]
    d0, d1, d2 = d[:, :seg], d[:, seg:2 * seg], d[:, 2 * seg:]

    dotprod = p0 * d0 + p1 * d1 + p2 * d2      # (H, seg)
    d_norm_sq = d0 * d0 + d1 * d1 + d2 * d2    # (H, seg)
    coef = dotprod * pl.reciprocal(d_norm_sq + EPS, approx=True)
    s = (1.0 - NEG_SLOPE) * jnp.where(dotprod >= 0.0, 0.0, coef)

    # VN leaky-ReLU, algebraically identical to the masked formulation: h = p - s*d.
    h = jnp.concatenate([p0 - s * d0, p1 - s * d1, p2 - s * d2], axis=1)  # (H, L)

    # Mean pool over N per (component, batch) via one matmul; single store.
    out_ref[...] = jnp.dot(h, pool_ref[...],
                           preferred_element_type=jnp.float32).astype(out_ref.dtype)


def vnn_block_forward(x, w1, wd, w2, *, block_b=None):
    """x: (B, C_in, 3, N) float32 -> (B, C_out, 3) float32."""
    B, C_in, K, N = x.shape
    assert K == 3
    H = w1.shape[0]
    C_out = w2.shape[0]

    # Batch block per grid step: largest divisor of B <= 8 that still leaves >= 2 grid
    # steps when possible (keeps both v7x TensorCores busy).
    if block_b is None:
        target = min(8, max(1, B // 2))
        block_b = 1
        for tb in range(target, 0, -1):
            if B % tb == 0:
                block_b = tb
                break
    TB = block_b
    assert B % TB == 0
    G = B // TB
    L = 3 * TB * N

    # Wrapper-side layout plumbing: per batch block, lane order is (k, b_local, n).
    xk = jnp.transpose(x.reshape(G, TB, C_in, 3, N), (0, 2, 3, 1, 4)).reshape(G, C_in, L)

    # Fuse the direction matmul into the input matmul: d = Wd@(W1@x) = (Wd@W1)@x.
    w_stack = jnp.concatenate([w1, wd @ w1], axis=0)  # (2H, C_in)

    # Block-diagonal mean-pool matrix: column (k*TB + b) averages lanes of component k,
    # local batch element b.
    l_idx = jnp.arange(L)
    col = (l_idx // (TB * N)) * TB + (l_idx % (TB * N)) // N
    pool_mat = (col[:, None] == jnp.arange(3 * TB)[None, :]).astype(jnp.float32) / N

    pooled = pl.pallas_call(
        _vnn_kernel,
        out_shape=jax.ShapeDtypeStruct((G, H, 3 * TB), jnp.float32),
        grid_spec=pltpu.PrefetchScalarGridSpec(
            num_scalar_prefetch=0,
            grid=(G,),
            in_specs=[
                pl.BlockSpec((None, C_in, L), lambda g: (g, 0, 0)),
                pl.BlockSpec((2 * H, C_in), lambda g: (0, 0)),
                pl.BlockSpec((L, 3 * TB), lambda g: (0, 0)),
            ],
            out_specs=pl.BlockSpec((None, H, 3 * TB), lambda g: (g, 0, 0)),
        ),
        compiler_params=pltpu.CompilerParams(
            dimension_semantics=("parallel",)),
    )(xk, w_stack, pool_mat)

    # Last VNLinear hoisted out of the kernel (exact: mean is linear).
    m = pooled.reshape(G, H, 3, TB).transpose(0, 3, 1, 2).reshape(B, H, 3)
    return jnp.einsum('oh,bhk->bok', w2, m)


def vnn_block_reference(x, w1, wd, w2):
    """Pure-JAX reference mirroring the PyTorch vnnlayers semantics."""
    p = jnp.einsum('oc,bckn->bokn', w1, x)
    d = jnp.einsum('oh,bhkn->bokn', wd, p)
    dotprod = jnp.sum(p * d, axis=2, keepdims=True)
    d_norm_sq = jnp.sum(d * d, axis=2, keepdims=True)
    mask = (dotprod >= 0.0).astype(x.dtype)
    h = (NEG_SLOPE * p
         + (1.0 - NEG_SLOPE) * (mask * p
                                + (1.0 - mask) * (p - (dotprod / (d_norm_sq + EPS)) * d)))
    y = jnp.einsum('oh,bhkn->bokn', w2, h)
    return jnp.mean(y, axis=-1)


if __name__ == "__main__":
    B, C_in, H, C_out, N = 2, 4, 8, 8, 128

    key = jax.random.PRNGKey(0)
    kx, k1, kd, k2 = jax.random.split(key, 4)

    x = jax.random.normal(kx, (B, C_in, 3, N), dtype=jnp.float32)
    # Deterministic "nn.Linear(bias=False)"-style weights.
    w1 = jax.random.uniform(k1, (H, C_in), jnp.float32,
                            minval=-1.0 / jnp.sqrt(C_in), maxval=1.0 / jnp.sqrt(C_in))
    wd = jax.random.uniform(kd, (H, H), jnp.float32,
                            minval=-1.0 / jnp.sqrt(H), maxval=1.0 / jnp.sqrt(H))
    w2 = jax.random.uniform(k2, (C_out, H), jnp.float32,
                            minval=-1.0 / jnp.sqrt(H), maxval=1.0 / jnp.sqrt(H))

    out = jax.block_until_ready(vnn_block_forward(x, w1, wd, w2))
    ref = jax.block_until_ready(vnn_block_reference(x, w1, wd, w2))

    assert out.shape == (B, C_out, 3), out.shape
    assert jnp.allclose(out, ref, rtol=2e-3, atol=2e-3), \
        f"max abs err {jnp.max(jnp.abs(out - ref))}"

    print("KERNEL_OK")
</pallas_src>

<mosaic_0001>
module attributes {stable_mosaic.version = 11 : i64} {
  func.func @_vnn_kernel(%arg0: i32, %arg1: memref<1x4x384xf32, #tpu.memory_space<vmem>>, %arg2: memref<16x4xf32, #tpu.memory_space<vmem>>, %arg3: memref<384x3xf32, #tpu.memory_space<vmem>>, %arg4: memref<1x8x3xf32, #tpu.memory_space<vmem>>) attributes {dimension_semantics = [#tpu.dimension_semantics<parallel>], iteration_bounds = array<i64: 2>, scalar_prefetch = 0 : i64, scratch_operands = 0 : i64, tpu.core_type = #tpu.core_type<tc>, window_params = [{transform_indices = @transform_0, window_bounds = array<i64: 1, 4, 384>}, {pipeline_mode = #tpu.pipeline_mode<synchronous>, transform_indices = @transform_1, window_bounds = array<i64: 16, 4>}, {pipeline_mode = #tpu.pipeline_mode<synchronous>, transform_indices = @transform_2, window_bounds = array<i64: 384, 3>}, {transform_indices = @transform_3, window_bounds = array<i64: 1, 8, 3>}]} {
    %c0 = arith.constant 0 : index
    %c0_0 = arith.constant 0 : index
    %0 = vector.load %arg2[%c0, %c0_0] : memref<16x4xf32, #tpu.memory_space<vmem>>, vector<16x4xf32>
    %c0_1 = arith.constant 0 : index
    %c0_2 = arith.constant 0 : index
    %c0_3 = arith.constant 0 : index
    %1 = vector.load %arg1[%c0_1, %c0_2, %c0_3] : memref<1x4x384xf32, #tpu.memory_space<vmem>>, vector<1x4x384xf32>
    %2 = vector.shape_cast %1 : vector<1x4x384xf32> to vector<4x384xf32>
    %cst = arith.constant dense<0.000000e+00> : vector<16x384xf32>
    %3 = tpu.matmul %0, %2, %cst {dimension_numbers = #tpu.dot_dimension_numbers<[1], [0], [0], [1], [0, 0, 1, 1], [], []>} : vector<16x4xf32>, vector<4x384xf32>, vector<16x384xf32> -> vector<16x384xf32>
    %4 = vector.extract_strided_slice %3 {offsets = [0, 0], sizes = [8, 384], strides = [1, 1]} : vector<16x384xf32> to vector<8x384xf32>
    %5 = vector.extract_strided_slice %3 {offsets = [8, 0], sizes = [8, 384], strides = [1, 1]} : vector<16x384xf32> to vector<8x384xf32>
    %6 = vector.extract_strided_slice %4 {offsets = [0, 0], sizes = [8, 128], strides = [1, 1]} : vector<8x384xf32> to vector<8x128xf32>
    %7 = vector.extract_strided_slice %4 {offsets = [0, 128], sizes = [8, 128], strides = [1, 1]} : vector<8x384xf32> to vector<8x128xf32>
    %8 = vector.extract_strided_slice %4 {offsets = [0, 256], sizes = [8, 128], strides = [1, 1]} : vector<8x384xf32> to vector<8x128xf32>
    %9 = vector.extract_strided_slice %5 {offsets = [0, 0], sizes = [8, 128], strides = [1, 1]} : vector<8x384xf32> to vector<8x128xf32>
    %10 = vector.extract_strided_slice %5 {offsets = [0, 128], sizes = [8, 128], strides = [1, 1]} : vector<8x384xf32> to vector<8x128xf32>
    %11 = vector.extract_strided_slice %5 {offsets = [0, 256], sizes = [8, 128], strides = [1, 1]} : vector<8x384xf32> to vector<8x128xf32>
    %12 = arith.mulf %6, %9 : vector<8x128xf32>
    %13 = arith.mulf %7, %10 : vector<8x128xf32>
    %14 = arith.addf %12, %13 : vector<8x128xf32>
    %15 = arith.mulf %8, %11 : vector<8x128xf32>
    %16 = arith.addf %14, %15 : vector<8x128xf32>
    %17 = arith.mulf %9, %9 : vector<8x128xf32>
    %18 = arith.mulf %10, %10 : vector<8x128xf32>
    %19 = arith.addf %17, %18 : vector<8x128xf32>
    %20 = arith.mulf %11, %11 : vector<8x128xf32>
    %21 = arith.addf %19, %20 : vector<8x128xf32>
    %cst_4 = arith.constant 9.99999997E-7 : f32
    %22 = vector.broadcast %cst_4 : f32 to vector<8x128xf32>
    %23 = arith.addf %21, %22 : vector<8x128xf32>
    %24 = tpu.reciprocal %23 {approx = true} : vector<8x128xf32> -> vector<8x128xf32>
    %25 = arith.mulf %16, %24 : vector<8x128xf32>
    %cst_5 = arith.constant 0.000000e+00 : f32
    %26 = vector.broadcast %cst_5 : f32 to vector<8x128xf32>
    %27 = arith.cmpf oge, %16, %26 : vector<8x128xf32>
    %cst_6 = arith.constant 0.000000e+00 : f32
    %28 = vector.broadcast %cst_6 : f32 to vector<8x128xf32>
    %29 = arith.select %27, %28, %25 : vector<8x128xi1>, vector<8x128xf32>
    %cst_7 = arith.constant 8.000000e-01 : f32
    %30 = vector.broadcast %cst_7 : f32 to vector<8x128xf32>
    %31 = arith.mulf %30, %29 : vector<8x128xf32>
    %32 = arith.mulf %31, %9 : vector<8x128xf32>
    %33 = arith.subf %6, %32 : vector<8x128xf32>
    %34 = arith.mulf %31, %10 : vector<8x128xf32>
    %35 = arith.subf %7, %34 : vector<8x128xf32>
    %36 = arith.mulf %31, %11 : vector<8x128xf32>
    %37 = arith.subf %8, %36 : vector<8x128xf32>
    %38 = tpu.concatenate %33, %35, %37 in 1 : vector<8x128xf32>, vector<8x128xf32>, vector<8x128xf32> -> vector<8x384xf32>
    %c0_8 = arith.constant 0 : index
    %c0_9 = arith.constant 0 : index
    %39 = vector.load %arg3[%c0_8, %c0_9] : memref<384x3xf32, #tpu.memory_space<vmem>>, vector<384x3xf32>
    %cst_10 = arith.constant dense<0.000000e+00> : vector<8x3xf32>
    %40 = tpu.matmul %38, %39, %cst_10 {dimension_numbers = #tpu.dot_dimension_numbers<[1], [0], [0], [1], [0, 0, 1, 1], [], []>} : vector<8x384xf32>, vector<384x3xf32>, vector<8x3xf32> -> vector<8x3xf32>
    %c0_11 = arith.constant 0 : index
    %c0_12 = arith.constant 0 : index
    %c0_13 = arith.constant 0 : index
    %41 = vector.load %arg4[%c0_11, %c0_12, %c0_13] : memref<1x8x3xf32, #tpu.memory_space<vmem>>, vector<1x8x3xf32>
    %42 = vector.shape_cast %41 : vector<1x8x3xf32> to vector<8x3xf32>
    %43 = vector.shape_cast %40 : vector<8x3xf32> to vector<1x8x3xf32>
    tpu.vector_store %arg4[%c0_11, %c0_12, %c0_13], %43 {strides = array<i32>} : memref<1x8x3xf32, #tpu.memory_space<vmem>>, vector<1x8x3xf32>,
    return
  }
  func.func @transform_0(%arg0: i32) -> (i32, i32, i32) {
    %c0_i32 = arith.constant 0 : i32
    %c0_i32_0 = arith.constant 0 : i32
    %c0_i32_1 = arith.constant 0 : i32
    return %arg0, %c0_i32, %c0_i32_0 : i32, i32, i32
  }
  func.func @transform_1(%arg0: i32) -> (i32, i32) {
    %c0_i32 = arith.constant 0 : i32
    %c0_i32_0 = arith.constant 0 : i32
    %c0_i32_1 = arith.constant 0 : i32
    return %c0_i32, %c0_i32_0 : i32, i32
  }
  func.func @transform_2(%arg0: i32) -> (i32, i32) {
    %c0_i32 = arith.constant 0 : i32
    %c0_i32_0 = arith.constant 0 : i32
    %c0_i32_1 = arith.constant 0 : i32
    return %c0_i32, %c0_i32_0 : i32, i32
  }
  func.func @transform_3(%arg0: i32) -> (i32, i32, i32) {
    %c0_i32 = arith.constant 0 : i32
    %c0_i32_0 = arith.constant 0 : i32
    %c0_i32_1 = arith.constant 0 : i32
    return %arg0, %c0_i32, %c0_i32_0 : i32, i32, i32
  }
}

</mosaic_0001>

<bundles_post_ra>
// kernel: tpu_custom_call.1
= control target key start
LH: loop header
LB: loop body
LE: loop exit
PB: predicated region body
PF: predicated region fallthrough
CT: control target
= control target key end

     0   :  { %s506_s12 = smov 0   ;;  %s681_s0 = inlined_call_operand.vmem [shape: f32[2,4,384], index: 0, kind: input, shape index: {}]   ;;  %s682_s1 = inlined_call_operand.vmem [shape: f32[16,4], index: 1, kind: input, shape index: {}]   ;;  %s683_s2 = inlined_call_operand.vmem [shape: f32[384,3], index: 2, kind: input, shape index: {}]   ;;  %s684_s3 = inlined_call_operand.vmem [shape: f32[2,8,3], index: 3, kind: output, shape index: {}]  }
   0x1 LB: > { %s449_s13 = sadd.s32 4294967295, %s484_s12   ;;  %p453_p0 = scmp.ge.s32.totalorder %s484_s12, 1  ;;  %s484_s12 = sphi %s506_s12, %s13_s12  }
   0x2   : > { %p137_p1 = scmp.lt.s32.totalorder %s484_s12, 3 }
   0x4   : > { %p138_p2 = pnand %p453_p0, %p137_p1 }
   0x5   : > { %p160_p3 = scmp.lt.s32.totalorder (!%p138_p2), %s449_s13, 1 }
   0x6   : > { %141 = sbr.rel (%p138_p2) target bundleno = 340 (0x154), region = 32 }
   0xb   : > { %s686_s13 = smov (!%p160_p3, %s449_s13), 1  ;;  %vm188_vm0 = vcmask 1043456   ;;  %v169_v2 = vld [vmem:[%s682_s1] sm:$0xff]  ;;  %vm181_vm1 = vcmask 31744   ;;  %v170_v6 = vld [vmem:[%s682_s1 + $0x8] sm:$0xff]  ;;  %v301_v7 = vld [vmem:[%s683_s2 + $0x78] sm:$0xff] }
   0xc   : > { %s467_s14 = smul.u32 12, %s686_s13  ;;  %v317_v8 = vld [vmem:[%s683_s2 + $0xf8] sm:$0xff]  ;;  %334 = vmatpush.msra.mxu3 %v301_v7  ;;  %v300_v10 = vld [vmem:[%s683_s2 + $0x70] sm:$0xff]  ;;  %v299_v13 = vld [vmem:[%s683_s2 + $0x68] sm:$0xff]  ;;  %s455_s18 = sshll.u32 %s686_s13, 3  ;;  %vm394_vm3 = vcmask 23552  }
   0xd   : > { %v333_v9 = vld [vmem:[%s683_s2 + $0x178] sm:$0xff]  ;;  %354 = vmatpush.msra.mxu0 %v317_v8  ;;  %v316_v11 = vld [vmem:[%s683_s2 + $0xf0] sm:$0xff]  ;;  %v315_v14 = vld [vmem:[%s683_s2 + $0xe8] sm:$0xff]  ;;  %s168_s21 = scalar_lea.vmem %s684_s3, %s455_s18 }
   0xe   : > { %s164_s17 = scalar_lea.vmem %s681_s0, %s467_s14  ;;  %v332_v12 = vld [vmem:[%s683_s2 + $0x170] sm:$0xff]  ;;  %335 = vmatpush.msra.mxu3 %v300_v10  ;;  %v331_v15 = vld [vmem:[%s683_s2 + $0x168] sm:$0xff]  ;;  %v298_v16 = vld [vmem:[%s683_s2 + $0x60] sm:$0xff] }
   0xf   : > { %v171_v0 = vld [vmem:[%s164_s17] sm:$0xff]  ;;  %v172_v1 = vld [vmem:[%s164_s17 + $0x8] sm:$0xf]  ;;  %355 = vmatpush.msra.mxu0 %v316_v11  ;;  %v297_v19 = vld [vmem:[%s683_s2 + $0x58] sm:$0xff] }
  0x10   : > { %175 = vst [vmem:[#allocation1] ss:$2 sm:$0xff] %v171_v0  ;;  %v314_v17 = vld [vmem:[%s683_s2 + $0xe0] sm:$0xff]  ;;  %336 = vmatpush.msra.mxu3 %v299_v13  ;;  %v313_v20 = vld [vmem:[%s683_s2 + $0xd8] sm:$0xff]  ;;  %v296_v22 = vld [vmem:[%s683_s2 + $0x50] sm:$0xff] }
  0x11   : > { %177 = vst [vmem:[#allocation1 + $0x10] ss:$2 sm:$0xff] %v172_v1  ;;  %356 = vmatpush.msra.mxu0 %v315_v14  ;;  %v330_v18 = vld [vmem:[%s683_s2 + $0x160] sm:$0xff]  ;;  %v329_v21 = vld [vmem:[%s683_s2 + $0x158] sm:$0xff]  ;;  %v312_v23 = vld [vmem:[%s683_s2 + $0xd0] sm:$0xff] }
  0x12   : > { %337 = vmatpush.msra.mxu3 %v298_v16  ;;  %v328_v24 = vld [vmem:[%s683_s2 + $0x150] sm:$0xff]  ;;  %v295_v25 = vld [vmem:[%s683_s2 + $0x48] sm:$0xff]  ;;  %v294_v28 = vld [vmem:[%s683_s2 + $0x40] sm:$0xff] }
  0x13   : > { %357 = vmatpush.msra.mxu0 %v314_v17  ;;  %v311_v26 = vld [vmem:[%s683_s2 + $0xc8] sm:$0xff]  ;;  %v310_v29 = vld [vmem:[%s683_s2 + $0xc0] sm:$0xff]  ;;  %v293_v31 = vld [vmem:[%s683_s2 + $0x38] sm:$0xff] }
  0x14   : > { %338 = vmatpush.msra.mxu3 %v297_v19  ;;  %v327_v27 = vld [vmem:[%s683_s2 + $0x148] sm:$0xff]  ;;  %v326_v30 = vld [vmem:[%s683_s2 + $0x140] sm:$0xff]  ;;  %v309_v32 = vld [vmem:[%s683_s2 + $0xb8] sm:$0xff] }
  0x15   : > { %358 = vmatpush.msra.mxu0 %v313_v20  ;;  %v325_v33 = vld [vmem:[%s683_s2 + $0x138] sm:$0xff]  ;;  %v292_v35 = vld [vmem:[%s683_s2 + $0x30] sm:$0xff]  ;;  %v291_v38 = vld [vmem:[%s683_s2 + $0x28] sm:$0xff] }
  0x16   : > { %339 = vmatpush.msra.mxu3 %v296_v22  ;;  %v308_v36 = vld [vmem:[%s683_s2 + $0xb0] sm:$0xff]  ;;  %v307_v39 = vld [vmem:[%s683_s2 + $0xa8] sm:$0xff]  ;;  %v290_v41 = vld [vmem:[%s683_s2 + $0x20] sm:$0xff] }
  0x17   : > { %v178_v3 = vld.sshfl [vmem:[#allocation1] sm:$0xff pattern:$0x75316420]  ;;  %v179_v4 = vld.sshfl [vmem:[#allocation1 + $0x8] sm:$0xff pattern:$0x75316420]  ;;  %359 = vmatpush.msra.mxu0 %v312_v23 }
  0x18   : > { %456 = vmatpush.msk.msra.mxu2 %vm188_vm0, %v178_v3  ;;  %v180_v5 = vld.sshfl [vmem:[#allocation1 + $0x10] sm:$0xff pattern:$0x75316420]  ;;  %459 = vmatpush.msk.msra.mxu1 %vm188_vm0, %v179_v4  ;;  %v323_v40 = vld [vmem:[%s683_s2 + $0x128] sm:$0xff]  ;;  %v306_v42 = vld [vmem:[%s683_s2 + $0xa0] sm:$0xff] }
  0x19   : > { %457 = vmatmul.msk.f32.vlgmr.msra.gmra.mxu2 %vm181_vm1, %v169_v2  ;;  %460 = vmatmul.msk.f32.vlgmr.msra.gmra.mxu1 %vm181_vm1, %v169_v2  ;;  %v324_v37 = vld [vmem:[%s683_s2 + $0x130] sm:$0xff]  ;;  %v322_v43 = vld [vmem:[%s683_s2 + $0x120] sm:$0xff]  ;;  %v289_v44 = vld [vmem:[%s683_s2 + $0x18] sm:$0xff] }
  0x1a   : > { %462 = vmatpush.msk.msrb.mxu2 %vm188_vm0, %v180_v5  ;;  %374 = vmatpush.msrb.mxu1 %v333_v9  ;;  %v305_v45 = vld [vmem:[%s683_s2 + $0x98] sm:$0xff]  ;;  %v288_v49 = vld [vmem:[%s683_s2 + $0x10] sm:$0xff]  ;;  %v287_v52 = vld [vmem:[%s683_s2 + $0x8] sm:$0xff] }
  0x1b   : > { %340 = vmatpush.msra.mxu3 %v295_v25  ;;  %360 = vmatpush.msra.mxu0 %v311_v26  ;;  %v321_v46 = vld [vmem:[%s683_s2 + $0x118] sm:$0xff]  ;;  %v304_v50 = vld [vmem:[%s683_s2 + $0x90] sm:$0xff]  ;;  %v303_v53 = vld [vmem:[%s683_s2 + $0x88] sm:$0xff] }
  0x1c   : > { %375 = vmatpush.msrb.mxu1 %v332_v12  ;;  %v320_v51 = vld [vmem:[%s683_s2 + $0x110] sm:$0xff]  ;;  %v319_v54 = vld [vmem:[%s683_s2 + $0x108] sm:$0xff]  ;;  %v286_v55 = vld [vmem:[%s683_s2] sm:$0xff] }
  0x1d   : > { %341 = vmatpush.msra.mxu3 %v294_v28  ;;  %361 = vmatpush.msra.mxu0 %v310_v29  ;;  %v302_v56 = vld [vmem:[%s683_s2 + $0x80] sm:$0xff] }
  0x1e   : > { %376 = vmatpush.msrb.mxu1 %v331_v15  ;;  %v318_v57 = vld [vmem:[%s683_s2 + $0x100] sm:$0xff] }
  0x1f   : > { %342 = vmatpush.msra.mxu3 %v293_v31  ;;  %362 = vmatpush.msra.mxu0 %v309_v32 }
  0x20   : > { %377 = vmatpush.msrb.mxu1 %v330_v18 }
  0x21   : > { %458 = vmatmul.msk.f32.gmra.mxu2 %vm181_vm1, %v170_v6  ;;  %461 = vmatmul.msk.f32.gmra.mxu1 %vm181_vm1, %v170_v6 }
  0x22   : > { %378 = vmatpush.msrb.mxu1 %v329_v21  ;;  %343 = vmatpush.msra.mxu3 %v292_v35 }
  0x23   : > { %363 = vmatpush.msra.mxu0 %v308_v36 }
  0x24   : > { %379 = vmatpush.msrb.mxu1 %v328_v24  ;;  %344 = vmatpush.msra.mxu3 %v291_v38 }
  0x25   : > { %364 = vmatpush.msra.mxu0 %v307_v39 }
  0x26   : > { %380 = vmatpush.msrb.mxu1 %v327_v27  ;;  %345 = vmatpush.msra.mxu3 %v290_v41 }
  0x27   : > { %365 = vmatpush.msra.mxu0 %v306_v42 }
  0x28   : > { %381 = vmatpush.msrb.mxu1 %v326_v30  ;;  %346 = vmatpush.msra.mxu3 %v289_v44 }
  0x29   : > { %463 = vmatmul.msk.f32.vlgmr.msrb.gmra.mxu2 %vm181_vm1, %v169_v2  ;;  %366 = vmatpush.msra.mxu0 %v305_v45 }
  0x2a   : > { %382 = vmatpush.msrb.mxu1 %v325_v33  ;;  %347 = vmatpush.msra.mxu3 %v288_v49 }
  0x2b   : > { %367 = vmatpush.msra.mxu0 %v304_v50 }
  0x2c   : > { %383 = vmatpush.msrb.mxu1 %v324_v37  ;;  %348 = vmatpush.msra.mxu3 %v287_v52 }
  0x2d   : > { %368 = vmatpush.msra.mxu0 %v303_v53 }
  0x2e   : > { %384 = vmatpush.msrb.mxu1 %v323_v40  ;;  %349 = vmatpush.msra.mxu3 %v286_v55 }
  0x2f   : > { %369 = vmatpush.msra.mxu0 %v302_v56 }
  0x30   : > { %385 = vmatpush.msrb.mxu1 %v322_v43 }
  0x31   : > { %464 = vmatmul.msk.f32.gmra.mxu2 %vm181_vm1, %v170_v6 }
  0x32   : > { %386 = vmatpush.msrb.mxu1 %v321_v46 }
  0x34   : > { %387 = vmatpush.msrb.mxu1 %v320_v51 }
  0x36   : > { %388 = vmatpush.msrb.mxu1 %v319_v54 }
  0x38   : > { %389 = vmatpush.msrb.mxu1 %v318_v57 }
  0x96   : > { %v235_v47 = vpop.f32.mrf.mxu1 }
  0x9c   : > { %v607_v34 = vpop.f32.mrf.mxu2 }
  0x9e   : > { %v238_v59 = vpop.f32.mrf.mxu1 }
  0x9f   : > { %v270_v61 = vmul.f32 %v238_v59, %v238_v59  ;;  %v265_v3 = vmul.f32 %v238_v59, %v235_v47 }
  0xa4   : > { %v215_v48 = vpop.f32.mrf.mxu2 }
  0xa5   : > { %v269_v60 = vmul.f32 %v215_v48, %v215_v48  ;;  %v264_v2 = vmul.f32 %v215_v48, %v607_v34 }
  0xa7   : > { %v271_v63 = vadd.f32 %v270_v61, %v269_v60  ;;  %v266_v6 = vadd.f32 %v265_v3, %v264_v2 }
  0xac   : > { %v258_v58 = vpop.f32.mrf.mxu2 }
  0xb4   : > { %v261_v62 = vpop.f32.mrf.mxu2 }
  0xb5   : > { %v272_v0 = vmul.f32 %v261_v62, %v261_v62  ;;  %v267_v5 = vmul.f32 %v261_v62, %v258_v58 }
  0xb7   : > { %v273_v1 = vadd.f32 %v272_v0, %v271_v63  ;;  %v268_v7 = vadd.f32 %v267_v5, %v266_v6 }
  0xb9   : > { %v274_v4 = vadd.f32 1e-06, %v273_v1  ;;  %vm277_vm2 = vcmp.ge.f32.partialorder %v268_v7, 0.0 }
  0xbb   : > { %476 = vrcp.f32 %v274_v4 }
  0xc1   : > { %v477_v8 = vpop.eup %476 }
  0xc2   : > { %v276_v9 = vmul.f32 %v477_v8, %v268_v7 }
  0xc4   : > { %v278_v10 = vsel %vm277_vm2, 0.0, %v276_v9 }
  0xc5   : > { %v279_v11 = vmul.f32 0.8, %v278_v10 }
  0xc7   : > { %v284_v12 = vmul.f32 %v279_v11, %v261_v62  ;;  %v280_v13 = vmul.f32 %v279_v11, %v215_v48  ;;  %v282_v14 = vmul.f32 %v279_v11, %v238_v59 }
  0xc9   : > { %v285_v15 = vsub.f32 %v258_v58, %v284_v12  ;;  %v281_v16 = vsub.f32 %v607_v34, %v280_v13  ;;  %v283_v17 = vsub.f32 %v235_v47, %v282_v14 }
  0xcb   : > { %350 = vmatmul.f32.vlgmr.msra.gmra.mxu3 %v281_v16  ;;  %370 = vmatmul.f32.vlgmr.msra.gmra.mxu0 %v283_v17 }
  0xcc   : > { %390 = vmatmul.f32.vlgmr.msrb.gmra.mxu1 %v285_v15 }
 0x148   : > { %v371_v18 = vpop.f32.mrf.mxu0 }
 0x149   : > { %v391_v21 = vpop.f32.mrf.mxu1 }
 0x14e   : > { %v351_v19 = vpop.f32.mrf.mxu3 }
 0x14f   : > { %v372_v20 = vadd.f32 %v371_v18, %v351_v19 }
 0x151   : > { %v392_v22 = vadd.f32 %v391_v21, %v372_v20 }
 0x153   : > { %395 = vst.msk [vmem:[%s168_s21] sm:$0xff] %vm394_vm3, %v392_v22 }
 0x154 PF: > { %s13_s12 = sadd.s32 1, %s484_s12  }
 0x155   : > { %p10_p4 = scmp.ge.s32.totalorder %s13_s12, 4  }
 0x157   :  { %12 = sbr.rel (!%p10_p4) target bundleno = 1 (0x1), region = 63 }

</bundles_post_ra>
